<compile_context>
chip_gen: v7x
topology: tpu7x:2x2x1
jax: 0.10.0
libtpu: 0.0.40
codegen_flags: <defaults>
</compile_context>

<pallas_src>
import math

import jax
import jax.numpy as jnp
from jax.experimental import pallas as pl
from jax.experimental.pallas import tpu as pltpu

_TARGET_BLOCK_BYTES = 4 * 1024 * 1024   # ~4 MiB per block
_MIN_GRID_STEPS = 8                      # keep the pipeline / both v7x TCs busy


def _pick_block_rows(rows: int, lane: int, itemsize: int) -> int:
    """Row-block size: multiple of 8, <= ~4 MiB, grid >= ~8 steps when possible."""
    if rows <= 8:
        return rows                       # full-extent small block
    bytes_per_row = max(1, lane * itemsize)
    max_rows_vmem = max(8, _TARGET_BLOCK_BYTES // bytes_per_row)
    target = pl.cdiv(rows, _MIN_GRID_STEPS)
    block = min(max_rows_vmem, target, rows)
    block = max(8, (block // 8) * 8)      # multiple of 8 sublanes
    return block


def _make_scale_kernel(scale: float, dtype):
    """Kernel body computing o = x * scale (the LambdaLayer lambd)."""
    scale = float(scale)
    native_lowp = jnp.issubdtype(dtype, jnp.floating) and jnp.dtype(dtype).itemsize < 4

    def kernel(x_ref, o_ref):
        x = x_ref[...]
        if native_lowp:
            # bf16/f16 stay in native dtype (v6e/v7x have a bf16 VALU; on v5e
            # the compiler upcasts internally) -> half the vreg pressure.
            o_ref[...] = x * jnp.asarray(scale, dtype=x.dtype)
        else:
            o_ref[...] = (x.astype(jnp.float32) * scale).astype(o_ref.dtype)

    return kernel


def lambda_layer(x: jax.Array, kernel_size: int = 9) -> jax.Array:
    """LambdaLayer(lambda x: x * kernel_size ** -0.5) on TPU via Pallas.

    Works for any input shape (canonically [B, C, T]); returns an array of
    identical shape/dtype.
    """
    scale = kernel_size ** -0.5
    orig_shape = x.shape
    orig_dtype = x.dtype
    n = math.prod(orig_shape) if orig_shape else 1

    if x.ndim == 0 or n == 0:
        # Degenerate shapes: nothing worth a kernel launch.
        return (x.astype(jnp.float32) * scale).astype(orig_dtype)

    # Copy-free 2-D view: collapse leading dims (bitcast reshape), keep the
    # original last dim as the lane axis (full-extent block).
    if x.ndim >= 2:
        lane = orig_shape[-1]
        rows = n // lane
    else:
        lane = n
        rows = 1
    x2d = x.reshape(rows, lane)

    itemsize = jnp.dtype(orig_dtype).itemsize
    block_rows = _pick_block_rows(rows, lane, itemsize)
    grid = (pl.cdiv(rows, block_rows),)   # partial boundary block is masked

    out2d = pl.pallas_call(
        _make_scale_kernel(scale, orig_dtype),
        out_shape=jax.ShapeDtypeStruct((rows, lane), orig_dtype),
        grid=grid,
        in_specs=[pl.BlockSpec((block_rows, lane), lambda i: (i, 0))],
        out_specs=pl.BlockSpec((block_rows, lane), lambda i: (i, 0)),
        compiler_params=pltpu.CompilerParams(
            dimension_semantics=("parallel",),      # megacore sharding on v7x
            vmem_limit_bytes=32 * 1024 * 1024,      # headroom on v5e's 16 MiB default
        ),
        cost_estimate=pl.CostEstimate(
            flops=n, transcendentals=0, bytes_accessed=2 * n * itemsize),
    )(x2d)

    return out2d.reshape(orig_shape)


if __name__ == "__main__":
    key = jax.random.PRNGKey(0)
    kernel_size = 9
    scale = kernel_size ** -0.5

    # Small canonical [B, C, T] test (full-extent single-block path).
    B, C, T = 2, 4, 16
    x_small = jax.random.normal(key, (B, C, T), dtype=jnp.float32)
    ref_small = x_small * scale
    out_small = jax.block_until_ready(lambda_layer(x_small, kernel_size=kernel_size))
    assert out_small.shape == x_small.shape and out_small.dtype == x_small.dtype
    assert jnp.allclose(out_small, ref_small, atol=1e-6, rtol=1e-6)

    # Ragged bf16 test: non-128-multiple last dim, multi-step grid with a
    # masked boundary row-block, native-bf16 compute path.
    key2 = jax.random.PRNGKey(0)
    x_ragged = jax.random.normal(key2, (2, 48, 250), dtype=jnp.bfloat16)
    ref_ragged = x_ragged * jnp.asarray(scale, dtype=jnp.bfloat16)
    out_ragged = jax.block_until_ready(lambda_layer(x_ragged, kernel_size=kernel_size))
    assert out_ragged.shape == x_ragged.shape and out_ragged.dtype == x_ragged.dtype
    assert jnp.allclose(out_ragged.astype(jnp.float32),
                        ref_ragged.astype(jnp.float32), atol=1e-2, rtol=1e-2)

    print("KERNEL_OK")
</pallas_src>

<mosaic_0001>
module attributes {stable_mosaic.version = 11 : i64} {
  func.func @kernel(%arg0: i32, %arg1: memref<8x16xf32, #tpu.memory_space<vmem>>, %arg2: memref<8x16xf32, #tpu.memory_space<vmem>>) attributes {dimension_semantics = [#tpu.dimension_semantics<parallel>], iteration_bounds = array<i64: 1>, scalar_prefetch = 0 : i64, scratch_operands = 0 : i64, tpu.core_type = #tpu.core_type<tc>, window_params = [{transform_indices = @transform_0, window_bounds = array<i64: 8, 16>}, {transform_indices = @transform_1, window_bounds = array<i64: 8, 16>}]} {
    %c0 = arith.constant 0 : index
    %c0_0 = arith.constant 0 : index
    %0 = vector.load %arg1[%c0, %c0_0] : memref<8x16xf32, #tpu.memory_space<vmem>>, vector<8x16xf32>
    %cst = arith.constant 0.333333343 : f32
    %1 = vector.broadcast %cst : f32 to vector<8x16xf32>
    %2 = arith.mulf %0, %1 : vector<8x16xf32>
    %c0_1 = arith.constant 0 : index
    %c0_2 = arith.constant 0 : index
    %3 = vector.load %arg2[%c0_1, %c0_2] : memref<8x16xf32, #tpu.memory_space<vmem>>, vector<8x16xf32>
    tpu.vector_store %arg2[%c0_1, %c0_2], %2 {strides = array<i32>} : memref<8x16xf32, #tpu.memory_space<vmem>>, vector<8x16xf32>,
    return
  }
  func.func @transform_0(%arg0: i32) -> (i32, i32) {
    %c0_i32 = arith.constant 0 : i32
    %c0_i32_0 = arith.constant 0 : i32
    return %arg0, %c0_i32 : i32, i32
  }
  func.func @transform_1(%arg0: i32) -> (i32, i32) {
    %c0_i32 = arith.constant 0 : i32
    %c0_i32_0 = arith.constant 0 : i32
    return %arg0, %c0_i32 : i32, i32
  }
}

</mosaic_0001>

<bundles_post_ra>
// kernel: tpu_custom_call.1
= control target key start
LH: loop header
LB: loop body
LE: loop exit
PB: predicated region body
PF: predicated region fallthrough
CT: control target
= control target key end

     0   :  { %6 = vsyncpa [#allocation3], 0  ;;  %s126_s0 = inlined_call_operand.hbm [shape: f32[8,16], index: 0, kind: input, shape index: {}]   ;;  %s127_s1 = inlined_call_operand.hbm [shape: f32[8,16], index: 1, kind: output, shape index: {}]  }
   0x1   :  { %7 = vsyncpa [#allocation4], 0  ;;  %s90_s6 = smov [#allocation2]   ;;  %s42_s10 = scalar_lea.hbm %s126_s0, 128 }
   0x2   :  { %s14_s7 = sshll.u32 %s90_s6, 4  ;;  %p43_p0 = scmp.ne.s32.totalorder %s126_s0, %s42_s10  ;;  %s15_s7 = int_to_ptr.vmem [resolvable:$true] %s14_s7 }
   0x3   :  { %p46_p1 = scmp.lt.u32.totalorder %s42_s10, %s126_s0 }
   0x5   :  { %p48_p2 = pnand %p46_p1, %p43_p0 }
   0x7   :  { %51 = shalt.err (!%p48_p2)
}
   0x8   :  { %s52_s15 = scalar_lea.vmem %s15_s7, 128  ;;  %p57_p4 = scmp.lt.s32.totalorder %s15_s7, %s15_s7 }
   0x9   :  { %p53_p3 = scmp.ne.s32.totalorder %s15_s7, %s52_s15  ;;  %p58_p5 = scmp.lt.s32.totalorder %s52_s15, %s52_s15 }
   0xb   :  { %p59_p6 = por %p58_p5, %p57_p4 }
   0xd   :  { %p60_p7 = pnand %p59_p6, %p53_p3 }
   0xf   :  { %63 = shalt.err (!%p60_p7)
}
  0x10   :  { %17 = dma.hbm_to_vmem [thread:$0]  %s126_s0, 128, %s15_s7, [#allocation3]  }
  0x11   :  { %86 = dma.done.wait [#allocation3], 128  }
  0x12   :  { %87 = vsyncadd [#allocation3], 4294967168  ;;  %s91_s18 = smov [#allocation5]   ;;  %v21_v0 = vld [vmem:[#allocation2] sm:$0xff]  ;;  %vm23_vm0 = vcmask 130048  }
  0x13   :  { %s31_s19 = sshll.u32 %s91_s18, 4  ;;  %v22_v1 = vmul.f32 0.33333334, %v21_v0  ;;  %s32_s19 = int_to_ptr.vmem [resolvable:$true] %s31_s19 }
  0x14   :  { %s64_s20 = scalar_lea.vmem %s32_s19, 128  ;;  %p69_p9 = scmp.lt.s32.totalorder %s32_s19, %s32_s19 }
  0x15   :  { %24 = vst.msk [vmem:[#allocation5] sm:$0xff] %vm23_vm0, %v22_v1  ;;  %p65_p8 = scmp.ne.s32.totalorder %s32_s19, %s64_s20  ;;  %p70_p10 = scmp.lt.s32.totalorder %s64_s20, %s64_s20 }
  0x17   :  { %p71_p11 = por %p70_p10, %p69_p9 }
  0x19   :  { %p72_p12 = pnand %p71_p11, %p65_p8 }
  0x1b   :  { %75 = shalt.err (!%p72_p12)
}
  0x1c   :  { %s76_s0 = scalar_lea.hbm %s127_s1, 128 }
  0x1d   :  { %p77_p13 = scmp.ne.s32.totalorder %s127_s1, %s76_s0  ;;  %p80_p0 = scmp.lt.u32.totalorder %s76_s0, %s127_s1 }
  0x1f   :  { %p82_p1 = pnand %p80_p0, %p77_p13 }
  0x21   :  { %85 = shalt.err (!%p82_p1)
}
  0x22   :  { %34 = dma.vmem_to_hbm [thread:$0]  %s32_s19, 128, %s127_s1, [#allocation4]  }
  0x23   :  { %88 = dma.done.wait [#allocation4], 128  }
  0x24   :  { %89 = vsyncadd [#allocation4], 4294967168 }
  0x25   :  { %38 = vsyncpa [#allocation3], 1 }
  0x26   :  { %39 = vsyncpa [#allocation4], 1 }

</bundles_post_ra>
